<compile_context>
chip_gen: v7x
topology: tpu7x:2x2x1
jax: 0.10.0
libtpu: 0.0.40
codegen_flags: <defaults>
</compile_context>

<pallas_src>
import jax
import jax.numpy as jnp
from jax.experimental import pallas as pl
from jax.experimental.pallas import tpu as pltpu


def _round_up(x, m):
    return ((x + m - 1) // m) * m


def _choose_time_tile(T, c_in, c_out, kernel_size, pad, itemsize,
                      vmem_budget=40 << 20):
    """Largest time tile that divides T, covers the receptive field and keeps
    double-buffered I/O tiles + history/stack scratch inside a VMEM budget that
    is safe on every generation (v7x has only 64 MiB physical VMEM)."""
    if pad > 0:
        padl = _round_up(pad, 128)
        per_t = itemsize * ((2 + 1 + kernel_size) * (c_in + c_out))
        fixed = itemsize * (c_in + c_out) * padl
    else:
        per_t = itemsize * 2 * (c_in + c_out)
        fixed = 0
    budget_tt = max(128, (vmem_budget - fixed) // max(per_t, 1))
    for cand in (2048, 1024, 512, 256, 128):
        if cand <= T and T % cand == 0 and cand >= pad and cand <= budget_tt:
            return cand
    return T  # fall back: single tile over the whole sequence


def _make_kernel(kernel_size, dilation, pad, padl, tt, c_in, c_out, has_skip):
    offset = padl - pad  # first column of the history region that is ever read

    def kernel(x_ref, w1_ref, b1_ref, w2_ref, b2_ref, *rest):
        if has_skip:
            ws_ref, bs_ref, o_ref, *scratch = rest
        else:
            ws_ref = bs_ref = None
            o_ref, *scratch = rest

        x = x_ref[0]                                        # (c_in, tt)

        if pad > 0:
            buf1, buf2, stack1, stack2 = scratch
            t = pl.program_id(1)

            @pl.when(t == 0)
            def _zero_history():
                # Only [offset:padl] is ever read from the history region.
                buf1[:, offset:padl] = jnp.zeros((c_in, pad), buf1.dtype)
                buf2[:, offset:padl] = jnp.zeros((c_out, pad), buf2.dtype)

            def fused_conv(cur, buf, stack, w_ref, b_ref, c):
                # cur:   (c, tt) current tile, in registers
                # buf:   (c, padl + tt) = [lane-aligned history | current tile]
                # stack: (K*c, tt) stacked taps; w_ref: (c_out, K*c); b_ref: (c_out, 1)
                buf[:, padl:] = cur
                # Aligned tap (k = K-1) straight from registers.
                stack[(kernel_size - 1) * c:, :] = cur
                for k in range(kernel_size - 1):            # static unrolled taps
                    s = offset + k * dilation
                    stack[k * c:(k + 1) * c, :] = buf[:, s:s + tt]
                acc = jnp.dot(w_ref[...], stack[...],
                              preferred_element_type=jnp.float32)
                # Carry the last `pad` timesteps to the next time tile, straight
                # from registers (no VMEM re-read).
                buf[:, offset:padl] = cur[:, tt - pad:]
                return acc + b_ref[...].astype(jnp.float32)  # (c_out, tt)

            h = jnp.maximum(fused_conv(x, buf1, stack1, w1_ref, b1_ref, c_in), 0.0)
            h = h.astype(x.dtype)
            h = jnp.maximum(fused_conv(h, buf2, stack2, w2_ref, b2_ref, c_out), 0.0)
        else:
            # kernel_size == 1: plain 1x1 convs, no history/stack needed.
            h = jnp.dot(w1_ref[...], x, preferred_element_type=jnp.float32)
            h = jnp.maximum(h + b1_ref[...].astype(jnp.float32), 0.0)
            h = jnp.dot(w2_ref[...], h.astype(x.dtype),
                        preferred_element_type=jnp.float32)
            h = jnp.maximum(h + b2_ref[...].astype(jnp.float32), 0.0)

        # ---- skip / residual + final ReLU ----------------------------------
        if has_skip:
            res = jnp.dot(ws_ref[...], x, preferred_element_type=jnp.float32)
            res = res + bs_ref[...].astype(jnp.float32)
        else:
            res = x.astype(jnp.float32)

        o_ref[0] = jnp.maximum(h + res, 0.0).astype(o_ref.dtype)

    return kernel


def tcn_residual_block(x_bct, params, *, kernel_size, dilation, time_tile=None):
    """x_bct: (B, Cin, T) -> (B, Cout, T), matching the PyTorch module.

    params = (w1, b1, w2, b2[, ws, bs]) with
      w*: (K, Cout, Cin)  (PyTorch Conv1d weight (Cout, Cin, K) -> transpose(2,0,1))
      b*: (Cout, 1)
      ws: (Cout, Cin), bs: (Cout, 1)   -- 1x1 skip conv, only when Cin != Cout
    """
    B, c_in, T = x_bct.shape
    w1, b1, w2, b2 = params[:4]
    c_out = w1.shape[1]
    pad = (kernel_size - 1) * dilation
    has_skip = c_in != c_out
    itemsize = x_bct.dtype.itemsize

    tt = (_choose_time_tile(T, c_in, c_out, kernel_size, pad, itemsize)
          if time_tile is None else time_tile)
    # TODO(synk): support T not divisible by time_tile (ragged last tile).
    assert T % tt == 0, "time_tile must divide T"
    if pad > 0:
        # TODO(synk): for very large dilations (pad > tile), split the causal
        # history across multiple carried tiles instead of asserting.
        assert tt >= pad, "time_tile must be >= (kernel_size - 1) * dilation"
    nt = T // tt
    padl = _round_up(pad, 128) if pad > 0 else 0   # lane-aligned history region

    # Host-side tap fusion: (K, Cout, Cin) -> (Cout, K*Cin) so every conv is a
    # single MXU matmul with contraction depth K*Cin instead of K pushes.
    w1_flat = jnp.transpose(w1, (1, 0, 2)).reshape(c_out, kernel_size * c_in)
    w2_flat = jnp.transpose(w2, (1, 0, 2)).reshape(c_out, kernel_size * c_out)

    inputs = [x_bct, w1_flat, b1, w2_flat, b2]
    in_specs = [
        pl.BlockSpec((1, c_in, tt), lambda b, t: (b, 0, t)),
        # Grid-invariant weight/bias blocks. (Negligible VMEM at these channel
        # counts; for very large Cout consider pipeline_mode=pl.Buffered(1) to
        # avoid default double-buffering of the constant blocks.)
        pl.BlockSpec((c_out, kernel_size * c_in), lambda b, t: (0, 0)),
        pl.BlockSpec((c_out, 1), lambda b, t: (0, 0)),
        pl.BlockSpec((c_out, kernel_size * c_out), lambda b, t: (0, 0)),
        pl.BlockSpec((c_out, 1), lambda b, t: (0, 0)),
    ]
    if has_skip:
        ws, bs = params[4], params[5]
        inputs += [ws, bs]
        in_specs += [
            pl.BlockSpec((c_out, c_in), lambda b, t: (0, 0)),
            pl.BlockSpec((c_out, 1), lambda b, t: (0, 0)),
        ]

    scratch_shapes = []
    scratch_bytes = 0
    if pad > 0:
        scratch_shapes = [
            pltpu.VMEM((c_in, padl + tt), x_bct.dtype),            # conv1 history
            pltpu.VMEM((c_out, padl + tt), x_bct.dtype),           # conv2 history
            pltpu.VMEM((kernel_size * c_in, tt), x_bct.dtype),     # conv1 tap stack
            pltpu.VMEM((kernel_size * c_out, tt), x_bct.dtype),    # conv2 tap stack
        ]
        scratch_bytes = itemsize * ((c_in + c_out) * (padl + tt)
                                    + kernel_size * (c_in + c_out) * tt)

    weight_bytes = sum(int(p.size) * p.dtype.itemsize for p in inputs[1:])
    io_bytes = 2 * itemsize * (c_in + c_out) * tt          # double-buffered tiles
    vmem_need = io_bytes + scratch_bytes + 2 * weight_bytes
    # Explicit VMEM limit: above the 16/32 MiB scoped defaults, but v7x-safe.
    vmem_limit = int(min(64 << 20, max(32 << 20, 2 * vmem_need)))

    flops = 2 * B * T * (kernel_size * c_in * c_out
                         + kernel_size * c_out * c_out
                         + (c_in * c_out if has_skip else 0))
    bytes_accessed = (int(x_bct.size) + B * c_out * T) * itemsize + weight_bytes

    kernel = _make_kernel(kernel_size, dilation, pad, padl, tt,
                          c_in, c_out, has_skip)

    return pl.pallas_call(
        kernel,
        out_shape=jax.ShapeDtypeStruct((B, c_out, T), x_bct.dtype),
        grid_spec=pltpu.PrefetchScalarGridSpec(
            num_scalar_prefetch=0,
            grid=(B, nt),
            in_specs=in_specs,
            out_specs=pl.BlockSpec((1, c_out, tt), lambda b, t: (b, 0, t)),
            scratch_shapes=scratch_shapes,
        ),
        compiler_params=pltpu.CompilerParams(
            dimension_semantics=("parallel", "arbitrary"),
            vmem_limit_bytes=vmem_limit),
        cost_estimate=pl.CostEstimate(
            flops=flops, transcendentals=0, bytes_accessed=bytes_accessed),
    )(*inputs)


def _ref_block(x_bct, params, kernel_size, dilation):
    """Pure-JAX reference matching PyTorch semantics (f32)."""
    pad = (kernel_size - 1) * dilation
    w1, b1, w2, b2 = [p.astype(jnp.float32) for p in params[:4]]
    x = x_bct.astype(jnp.float32)                       # (B, C, T)
    T = x.shape[2]

    def cconv(v, w, b):
        vp = jnp.pad(v, ((0, 0), (0, 0), (pad, 0)))
        acc = None
        for k in range(kernel_size):
            term = jnp.einsum('oc,bct->bot', w[k],
                              vp[:, :, k * dilation:k * dilation + T])
            acc = term if acc is None else acc + term
        return acc + b[None]

    h = jax.nn.relu(cconv(x, w1, b1))
    h = jax.nn.relu(cconv(h, w2, b2))
    if len(params) > 4:
        ws = params[4].astype(jnp.float32)
        bs = params[5].astype(jnp.float32)
        res = jnp.einsum('oc,bct->bot', ws, x) + bs[None]
    else:
        res = x
    return jax.nn.relu(h + res)


if __name__ == "__main__":
    # Module config: in_channels=4, out_channels=8, kernel_size=3, dilation=2
    B, C_IN, C_OUT, T = 2, 4, 8, 1024
    K, DIL = 3, 2
    TT = 512   # >= 512 per perf review; two time tiles exercise the causal carry

    key = jax.random.PRNGKey(0)
    k_x, k_w1, k_b1, k_w2, k_b2, k_ws, k_bs = jax.random.split(key, 7)

    x = jax.random.normal(k_x, (B, C_IN, T), dtype=jnp.float32)

    # Weights stored as (K, Cout, Cin), biases as (Cout, 1) for the (C, T) layout.
    w1 = jax.random.normal(k_w1, (K, C_OUT, C_IN), dtype=jnp.float32) * 0.3
    b1 = jax.random.normal(k_b1, (C_OUT, 1), dtype=jnp.float32) * 0.1
    w2 = jax.random.normal(k_w2, (K, C_OUT, C_OUT), dtype=jnp.float32) * 0.3
    b2 = jax.random.normal(k_b2, (C_OUT, 1), dtype=jnp.float32) * 0.1
    ws = jax.random.normal(k_ws, (C_OUT, C_IN), dtype=jnp.float32) * 0.3  # 1x1 skip
    bs = jax.random.normal(k_bs, (C_OUT, 1), dtype=jnp.float32) * 0.1

    params = (w1, b1, w2, b2, ws, bs)
    ref = _ref_block(x, params, K, DIL)

    # Explicit large time tile (two tiles -> exercises cross-tile history carry).
    out = tcn_residual_block(x, params, kernel_size=K, dilation=DIL, time_tile=TT)
    out = jax.block_until_ready(out)
    assert out.shape == (B, C_OUT, T), out.shape
    err = float(jnp.max(jnp.abs(out - ref)))
    assert jnp.allclose(out, ref, atol=1e-4, rtol=1e-4), err

    # VMEM-derived default time tile.
    out2 = tcn_residual_block(x, params, kernel_size=K, dilation=DIL)
    out2 = jax.block_until_ready(out2)
    err2 = float(jnp.max(jnp.abs(out2 - ref)))
    assert jnp.allclose(out2, ref, atol=1e-4, rtol=1e-4), err2

    print("KERNEL_OK")
</pallas_src>

<mosaic_0001>
module attributes {stable_mosaic.version = 11 : i64} {
  func.func @kernel(%arg0: i32, %arg1: i32, %arg2: memref<1x4x512xf32, #tpu.memory_space<vmem>>, %arg3: memref<8x12xf32, #tpu.memory_space<vmem>>, %arg4: memref<8x1xf32, #tpu.memory_space<vmem>>, %arg5: memref<8x24xf32, #tpu.memory_space<vmem>>, %arg6: memref<8x1xf32, #tpu.memory_space<vmem>>, %arg7: memref<8x4xf32, #tpu.memory_space<vmem>>, %arg8: memref<8x1xf32, #tpu.memory_space<vmem>>, %arg9: memref<1x8x512xf32, #tpu.memory_space<vmem>>, %arg10: memref<4x640xf32, #tpu.memory_space<vmem>>, %arg11: memref<8x640xf32, #tpu.memory_space<vmem>>, %arg12: memref<12x512xf32, #tpu.memory_space<vmem>>, %arg13: memref<24x512xf32, #tpu.memory_space<vmem>>) attributes {dimension_semantics = [#tpu.dimension_semantics<parallel>, #tpu.dimension_semantics<arbitrary>], iteration_bounds = array<i64: 2, 2>, scalar_prefetch = 0 : i64, scratch_operands = 4 : i64, tpu.core_type = #tpu.core_type<tc>, window_params = [{transform_indices = @transform_0, window_bounds = array<i64: 1, 4, 512>}, {pipeline_mode = #tpu.pipeline_mode<synchronous>, transform_indices = @transform_1, window_bounds = array<i64: 8, 12>}, {pipeline_mode = #tpu.pipeline_mode<synchronous>, transform_indices = @transform_2, window_bounds = array<i64: 8, 1>}, {pipeline_mode = #tpu.pipeline_mode<synchronous>, transform_indices = @transform_3, window_bounds = array<i64: 8, 24>}, {pipeline_mode = #tpu.pipeline_mode<synchronous>, transform_indices = @transform_4, window_bounds = array<i64: 8, 1>}, {pipeline_mode = #tpu.pipeline_mode<synchronous>, transform_indices = @transform_5, window_bounds = array<i64: 8, 4>}, {pipeline_mode = #tpu.pipeline_mode<synchronous>, transform_indices = @transform_6, window_bounds = array<i64: 8, 1>}, {transform_indices = @transform_7, window_bounds = array<i64: 1, 8, 512>}]} {
    %c0 = arith.constant 0 : index
    %c0_0 = arith.constant 0 : index
    %c0_1 = arith.constant 0 : index
    %0 = vector.load %arg2[%c0, %c0_0, %c0_1] : memref<1x4x512xf32, #tpu.memory_space<vmem>>, vector<1x4x512xf32>
    %1 = vector.shape_cast %0 : vector<1x4x512xf32> to vector<4x512xf32>
    %c0_i32 = arith.constant 0 : i32
    %2 = arith.cmpi eq, %arg1, %c0_i32 : i32
    %3 = arith.extui %2 : i1 to i32
    %c0_i32_2 = arith.constant 0 : i32
    %4 = arith.cmpi ne, %3, %c0_i32_2 : i32
    scf.if %4 {
      %cst_49 = arith.constant 0.000000e+00 : f32
      %48 = vector.broadcast %cst_49 : f32 to vector<4x4xf32>
      %c0_50 = arith.constant 0 : index
      %c124_51 = arith.constant 124 : index
      %49 = vector.load %arg10[%c0_50, %c124_51] : memref<4x640xf32, #tpu.memory_space<vmem>>, vector<4x4xf32>
      tpu.vector_store %arg10[%c0_50, %c124_51], %48 {strides = array<i32>} : memref<4x640xf32, #tpu.memory_space<vmem>>, vector<4x4xf32>,
      %cst_52 = arith.constant 0.000000e+00 : f32
      %50 = vector.broadcast %cst_52 : f32 to vector<8x4xf32>
      %c0_53 = arith.constant 0 : index
      %c124_54 = arith.constant 124 : index
      %51 = vector.load %arg11[%c0_53, %c124_54] : memref<8x640xf32, #tpu.memory_space<vmem>>, vector<8x4xf32>
      tpu.vector_store %arg11[%c0_53, %c124_54], %50 {strides = array<i32>} : memref<8x640xf32, #tpu.memory_space<vmem>>, vector<8x4xf32>,
    } else {
    }
    %c0_3 = arith.constant 0 : index
    %c128 = arith.constant 128 : index
    %5 = vector.load %arg10[%c0_3, %c128] : memref<4x640xf32, #tpu.memory_space<vmem>>, vector<4x512xf32>
    tpu.vector_store %arg10[%c0_3, %c128], %1 {strides = array<i32>} : memref<4x640xf32, #tpu.memory_space<vmem>>, vector<4x512xf32>,
    %c8 = arith.constant 8 : index
    %c0_4 = arith.constant 0 : index
    %6 = vector.load %arg12[%c8, %c0_4] : memref<12x512xf32, #tpu.memory_space<vmem>>, vector<4x512xf32>
    tpu.vector_store %arg12[%c8, %c0_4], %1 {strides = array<i32>} : memref<12x512xf32, #tpu.memory_space<vmem>>, vector<4x512xf32>,
    %c0_5 = arith.constant 0 : index
    %c124 = arith.constant 124 : index
    %7 = vector.load %arg10[%c0_5, %c124] : memref<4x640xf32, #tpu.memory_space<vmem>>, vector<4x512xf32>
    %c0_6 = arith.constant 0 : index
    %c0_7 = arith.constant 0 : index
    %8 = vector.load %arg12[%c0_6, %c0_7] : memref<12x512xf32, #tpu.memory_space<vmem>>, vector<4x512xf32>
    tpu.vector_store %arg12[%c0_6, %c0_7], %7 {strides = array<i32>} : memref<12x512xf32, #tpu.memory_space<vmem>>, vector<4x512xf32>,
    %c0_8 = arith.constant 0 : index
    %c126 = arith.constant 126 : index
    %9 = vector.load %arg10[%c0_8, %c126] : memref<4x640xf32, #tpu.memory_space<vmem>>, vector<4x512xf32>
    %c4 = arith.constant 4 : index
    %c0_9 = arith.constant 0 : index
    %10 = vector.load %arg12[%c4, %c0_9] : memref<12x512xf32, #tpu.memory_space<vmem>>, vector<4x512xf32>
    tpu.vector_store %arg12[%c4, %c0_9], %9 {strides = array<i32>} : memref<12x512xf32, #tpu.memory_space<vmem>>, vector<4x512xf32>,
    %c0_10 = arith.constant 0 : index
    %c0_11 = arith.constant 0 : index
    %11 = vector.load %arg3[%c0_10, %c0_11] : memref<8x12xf32, #tpu.memory_space<vmem>>, vector<8x12xf32>
    %c0_12 = arith.constant 0 : index
    %c0_13 = arith.constant 0 : index
    %12 = vector.load %arg12[%c0_12, %c0_13] : memref<12x512xf32, #tpu.memory_space<vmem>>, vector<12x512xf32>
    %cst = arith.constant dense<0.000000e+00> : vector<8x512xf32>
    %13 = tpu.matmul %11, %12, %cst {dimension_numbers = #tpu.dot_dimension_numbers<[1], [0], [0], [1], [0, 0, 1, 1], [], []>} : vector<8x12xf32>, vector<12x512xf32>, vector<8x512xf32> -> vector<8x512xf32>
    %14 = vector.extract_strided_slice %1 {offsets = [0, 508], sizes = [4, 4], strides = [1, 1]} : vector<4x512xf32> to vector<4x4xf32>
    %c0_14 = arith.constant 0 : index
    %c124_15 = arith.constant 124 : index
    %15 = vector.load %arg10[%c0_14, %c124_15] : memref<4x640xf32, #tpu.memory_space<vmem>>, vector<4x4xf32>
    tpu.vector_store %arg10[%c0_14, %c124_15], %14 {strides = array<i32>} : memref<4x640xf32, #tpu.memory_space<vmem>>, vector<4x4xf32>,
    %c0_16 = arith.constant 0 : index
    %c0_17 = arith.constant 0 : index
    %16 = vector.load %arg4[%c0_16, %c0_17] : memref<8x1xf32, #tpu.memory_space<vmem>>, vector<8x1xf32>
    %17 = vector.broadcast %16 : vector<8x1xf32> to vector<8x512xf32>
    %18 = arith.addf %13, %17 : vector<8x512xf32>
    %cst_18 = arith.constant 0.000000e+00 : f32
    %19 = vector.broadcast %cst_18 : f32 to vector<8x512xf32>
    %20 = arith.maximumf %18, %19 : vector<8x512xf32>
    %c0_19 = arith.constant 0 : index
    %c128_20 = arith.constant 128 : index
    %21 = vector.load %arg11[%c0_19, %c128_20] : memref<8x640xf32, #tpu.memory_space<vmem>>, vector<8x512xf32>
    tpu.vector_store %arg11[%c0_19, %c128_20], %20 {strides = array<i32>} : memref<8x640xf32, #tpu.memory_space<vmem>>, vector<8x512xf32>,
    %c16 = arith.constant 16 : index
    %c0_21 = arith.constant 0 : index
    %22 = vector.load %arg13[%c16, %c0_21] : memref<24x512xf32, #tpu.memory_space<vmem>>, vector<8x512xf32>
    tpu.vector_store %arg13[%c16, %c0_21], %20 {strides = array<i32>} : memref<24x512xf32, #tpu.memory_space<vmem>>, vector<8x512xf32>,
    %c0_22 = arith.constant 0 : index
    %c124_23 = arith.constant 124 : index
    %23 = vector.load %arg11[%c0_22, %c124_23] : memref<8x640xf32, #tpu.memory_space<vmem>>, vector<8x512xf32>
    %c0_24 = arith.constant 0 : index
    %c0_25 = arith.constant 0 : index
    %24 = vector.load %arg13[%c0_24, %c0_25] : memref<24x512xf32, #tpu.memory_space<vmem>>, vector<8x512xf32>
    tpu.vector_store %arg13[%c0_24, %c0_25], %23 {strides = array<i32>} : memref<24x512xf32, #tpu.memory_space<vmem>>, vector<8x512xf32>,
    %c0_26 = arith.constant 0 : index
    %c126_27 = arith.constant 126 : index
    %25 = vector.load %arg11[%c0_26, %c126_27] : memref<8x640xf32, #tpu.memory_space<vmem>>, vector<8x512xf32>
    %c8_28 = arith.constant 8 : index
    %c0_29 = arith.constant 0 : index
    %26 = vector.load %arg13[%c8_28, %c0_29] : memref<24x512xf32, #tpu.memory_space<vmem>>, vector<8x512xf32>
    tpu.vector_store %arg13[%c8_28, %c0_29], %25 {strides = array<i32>} : memref<24x512xf32, #tpu.memory_space<vmem>>, vector<8x512xf32>,
    %c0_30 = arith.constant 0 : index
    %c0_31 = arith.constant 0 : index
    %27 = vector.load %arg5[%c0_30, %c0_31] : memref<8x24xf32, #tpu.memory_space<vmem>>, vector<8x24xf32>
    %c0_32 = arith.constant 0 : index
    %c0_33 = arith.constant 0 : index
    %28 = vector.load %arg13[%c0_32, %c0_33] : memref<24x512xf32, #tpu.memory_space<vmem>>, vector<24x512xf32>
    %cst_34 = arith.constant dense<0.000000e+00> : vector<8x512xf32>
    %29 = tpu.matmul %27, %28, %cst_34 {dimension_numbers = #tpu.dot_dimension_numbers<[1], [0], [0], [1], [0, 0, 1, 1], [], []>} : vector<8x24xf32>, vector<24x512xf32>, vector<8x512xf32> -> vector<8x512xf32>
    %30 = vector.extract_strided_slice %20 {offsets = [0, 508], sizes = [8, 4], strides = [1, 1]} : vector<8x512xf32> to vector<8x4xf32>
    %c0_35 = arith.constant 0 : index
    %c124_36 = arith.constant 124 : index
    %31 = vector.load %arg11[%c0_35, %c124_36] : memref<8x640xf32, #tpu.memory_space<vmem>>, vector<8x4xf32>
    tpu.vector_store %arg11[%c0_35, %c124_36], %30 {strides = array<i32>} : memref<8x640xf32, #tpu.memory_space<vmem>>, vector<8x4xf32>,
    %c0_37 = arith.constant 0 : index
    %c0_38 = arith.constant 0 : index
    %32 = vector.load %arg6[%c0_37, %c0_38] : memref<8x1xf32, #tpu.memory_space<vmem>>, vector<8x1xf32>
    %33 = vector.broadcast %32 : vector<8x1xf32> to vector<8x512xf32>
    %34 = arith.addf %29, %33 : vector<8x512xf32>
    %cst_39 = arith.constant 0.000000e+00 : f32
    %35 = vector.broadcast %cst_39 : f32 to vector<8x512xf32>
    %36 = arith.maximumf %34, %35 : vector<8x512xf32>
    %c0_40 = arith.constant 0 : index
    %c0_41 = arith.constant 0 : index
    %37 = vector.load %arg7[%c0_40, %c0_41] : memref<8x4xf32, #tpu.memory_space<vmem>>, vector<8x4xf32>
    %cst_42 = arith.constant dense<0.000000e+00> : vector<8x512xf32>
    %38 = tpu.matmul %37, %1, %cst_42 {dimension_numbers = #tpu.dot_dimension_numbers<[1], [0], [0], [1], [0, 0, 1, 1], [], []>} : vector<8x4xf32>, vector<4x512xf32>, vector<8x512xf32> -> vector<8x512xf32>
    %c0_43 = arith.constant 0 : index
    %c0_44 = arith.constant 0 : index
    %39 = vector.load %arg8[%c0_43, %c0_44] : memref<8x1xf32, #tpu.memory_space<vmem>>, vector<8x1xf32>
    %40 = vector.broadcast %39 : vector<8x1xf32> to vector<8x512xf32>
    %41 = arith.addf %38, %40 : vector<8x512xf32>
    %42 = arith.addf %36, %41 : vector<8x512xf32>
    %cst_45 = arith.constant 0.000000e+00 : f32
    %43 = vector.broadcast %cst_45 : f32 to vector<8x512xf32>
    %44 = arith.maximumf %42, %43 : vector<8x512xf32>
    %c0_46 = arith.constant 0 : index
    %c0_47 = arith.constant 0 : index
    %c0_48 = arith.constant 0 : index
    %45 = vector.load %arg9[%c0_46, %c0_47, %c0_48] : memref<1x8x512xf32, #tpu.memory_space<vmem>>, vector<1x8x512xf32>
    %46 = vector.shape_cast %45 : vector<1x8x512xf32> to vector<8x512xf32>
    %47 = vector.shape_cast %44 : vector<8x512xf32> to vector<1x8x512xf32>
    tpu.vector_store %arg9[%c0_46, %c0_47, %c0_48], %47 {strides = array<i32>} : memref<1x8x512xf32, #tpu.memory_space<vmem>>, vector<1x8x512xf32>,
    return
  }
  func.func @transform_0(%arg0: i32, %arg1: i32) -> (i32, i32, i32) {
    %c0_i32 = arith.constant 0 : i32
    %c0_i32_0 = arith.constant 0 : i32
    return %arg0, %c0_i32, %arg1 : i32, i32, i32
  }
  func.func @transform_1(%arg0: i32, %arg1: i32) -> (i32, i32) {
    %c0_i32 = arith.constant 0 : i32
    %c0_i32_0 = arith.constant 0 : i32
    %c0_i32_1 = arith.constant 0 : i32
    return %c0_i32, %c0_i32_0 : i32, i32
  }
  func.func @transform_2(%arg0: i32, %arg1: i32) -> (i32, i32) {
    %c0_i32 = arith.constant 0 : i32
    %c0_i32_0 = arith.constant 0 : i32
    %c0_i32_1 = arith.constant 0 : i32
    return %c0_i32, %c0_i32_0 : i32, i32
  }
  func.func @transform_3(%arg0: i32, %arg1: i32) -> (i32, i32) {
    %c0_i32 = arith.constant 0 : i32
    %c0_i32_0 = arith.constant 0 : i32
    %c0_i32_1 = arith.constant 0 : i32
    return %c0_i32, %c0_i32_0 : i32, i32
  }
  func.func @transform_4(%arg0: i32, %arg1: i32) -> (i32, i32) {
    %c0_i32 = arith.constant 0 : i32
    %c0_i32_0 = arith.constant 0 : i32
    %c0_i32_1 = arith.constant 0 : i32
    return %c0_i32, %c0_i32_0 : i32, i32
  }
  func.func @transform_5(%arg0: i32, %arg1: i32) -> (i32, i32) {
    %c0_i32 = arith.constant 0 : i32
    %c0_i32_0 = arith.constant 0 : i32
    %c0_i32_1 = arith.constant 0 : i32
    return %c0_i32, %c0_i32_0 : i32, i32
  }
  func.func @transform_6(%arg0: i32, %arg1: i32) -> (i32, i32) {
    %c0_i32 = arith.constant 0 : i32
    %c0_i32_0 = arith.constant 0 : i32
    %c0_i32_1 = arith.constant 0 : i32
    return %c0_i32, %c0_i32_0 : i32, i32
  }
  func.func @transform_7(%arg0: i32, %arg1: i32) -> (i32, i32, i32) {
    %c0_i32 = arith.constant 0 : i32
    %c0_i32_0 = arith.constant 0 : i32
    return %arg0, %c0_i32, %arg1 : i32, i32, i32
  }
}

</mosaic_0001>

<bundles_post_ra>
// kernel: tpu_custom_call.1
= control target key start
LH: loop header
LB: loop body
LE: loop exit
PB: predicated region body
PF: predicated region fallthrough
CT: control target
= control target key end

     0   :  { %s1740_s0 = inlined_call_operand.hbm [shape: f32[2,4,1024], index: 0, kind: input, shape index: {}]   ;;  %s1741_s1 = inlined_call_operand.vmem [shape: f32[8,12], index: 1, kind: input, shape index: {}]   ;;  %s1742_s2 = inlined_call_operand.vmem [shape: f32[8,1], index: 2, kind: input, shape index: {}]   ;;  %s1743_s3 = inlined_call_operand.vmem [shape: f32[8,24], index: 3, kind: input, shape index: {}]   ;;  %s1744_s4 = inlined_call_operand.vmem [shape: f32[8,1], index: 4, kind: input, shape index: {}]   ;;  %s1745_s5 = inlined_call_operand.vmem [shape: f32[8,4], index: 5, kind: input, shape index: {}]   ;;  %s1746_s6 = inlined_call_operand.vmem [shape: f32[8,1], index: 6, kind: input, shape index: {}]   ;;  %s1747_s7 = inlined_call_operand.hbm [shape: f32[2,8,1024], index: 7, kind: output, shape index: {}]  }
   0x1   :  { %1753 = sst [smem:[#allocation15_spill]] %s1747_s7 }
   0x2   :  { %12 = vsyncpa [#allocation7], 0 }
   0x3   :  { %14 = vsyncpa [#allocation7 + $0x1], 0 }
   0x4   :  { %15 = vsyncpa [#allocation8], 0 }
   0x5   :  { %17 = vsyncpa [#allocation8 + $0x1], 0  ;;  %s1439_s24 = smov 0   ;;  %s1441_s25 = smov 0  }
   0x6   :  { %s1443_s26 = smov 0   ;;  %s1445_s27 = smov 0  }
   0x7   :  { %s1447_s28 = smov 0   ;;  %s1449_s29 = smov 0  }
   0x8   :  { %s1451_s30 = smov 0   ;;  %s1453_s8 = smov 0  }
   0x9 LB: > { %1754 = sst [smem:[#allocation12_spill]] %s1361_s24  ;;  %s1101_s9 = sadd.s32 4294967295, %s1389_s8   ;;  %s1389_s8 = sphi %s1453_s8, %s23_s8   ;;  %s1385_s30 = sphi %s1451_s30, %s1778_s30   ;;  %s1381_s29 = sphi %s1449_s29, %s1777_s29   ;;  %s1377_s28 = sphi %s1447_s28, %s1776_s28   ;;  %s1373_s27 = sphi %s1445_s27, %s1775_s27   ;;  %s1369_s26 = sphi %s1443_s26, %s1774_s26   ;;  %s1365_s25 = sphi %s1441_s25, %s1773_s25   ;;  %s1361_s24 = sphi %s1439_s24, %s1772_s24  }
   0xa   : > { %s1102_s10 = sadd.s32 4294967294, %s1389_s8   ;;  %s32_s11 = sadd.s32 1, %s1381_s29 }
   0xb   : > { %s35_s12 = sadd.s32 1, %s1385_s30  ;;  %p33_p0 = scmp.ge.s32.totalorder %s32_s11, 2 }
   0xc   : > { %s44_s13 = sadd.s32 1, %s1369_s26  ;;  %p51_p1 = scmp.ne.s32.totalorder %s1369_s26, %s1365_s25 }
   0xd   : > { %p52_p2 = scmp.eq.s32.totalorder %s1389_s8, 0  ;;  %s1780_s11 = smov (%p33_p0, %s32_s11), 0 }
   0xe   : > { %1755 = sst [smem:[#allocation13_spill]] %s1780_s11  ;;  %s1782_s12 = smov (!%p33_p0, %s35_s12), %s1385_s30 }
   0xf   : > { %s40_s14 = ssub.s32 %s1381_s29, %s1780_s11  ;;  %p1492_p3 = por %p52_p2, %p51_p1 }
  0x10   : > { %p37_p4 = scmp.ge.s32.totalorder %s1782_s12, 2  ;;  %p57_p5 = scmp.ne.s32.totalorder %s1365_s25, %s1361_s24 }
  0x11   : > { %p58_p6 = scmp.eq.s32.totalorder %s1101_s9, 0  ;;  %p209_p7 = scmp.eq.s32.totalorder %s1101_s9, 3 }
  0x12   : > { %s1784_s12 = smov (%p37_p4, %s1782_s12), 0  ;;  %p215_p10 = scmp.eq.s32.totalorder %s1102_s10, 3 }
  0x13   : > { %1757 = sst [smem:[#allocation14_spill]] %s1784_s12  ;;  %p1500_p8 = por %p58_p6, %p57_p5 }
  0x14   : > { %p1504_p9 = por %p209_p7, %p51_p1  ;;  %s39_s18 = ssub.s32 %s1385_s30, %s1784_s12 }
  0x15   : > { %s41_s19 = sor.u32 %s40_s14, %s39_s18  ;;  %p1510_p12 = por %p215_p10, %p57_p5 }
  0x16   : > { %s1759_s17 = scalar_select %p1504_p9, 1, 0 }
  0x17   : > { %p42_p11 = scmp.eq.s32.totalorder %s41_s19, 0  ;;  %p1165_p13 = scmp.lt.s32.totalorder %s1389_s8, 4 }
  0x18   : > { %s1760_s20 = scalar_select %p1510_p12, 1, 0 }
  0x19   : > { %s253_s21 = sand.u32 1, %s1369_s26   ;;  %s1106_s9 = sshll.u32 %s1381_s29, 2 }
  0x1a   : > { %s1517_s22 = scalar_select %p42_p11, %s1369_s26, %s44_s13  }
  0x1b   : > { %s1105_s23 = sshll.u32 %s253_s21, 4  ;;  %s1107_s11 = sshll.u32 %s1385_s30, 3 }
  0x1c   : > { %s257_s24 = scalar_lea.vmem [#allocation6], %s1105_s23  ;;  %s263_s12 = sadd.s32 %s1107_s11, %s1106_s9 }
  0x1d   : > { %s267_s7 = sshll.u32 %s257_s24, 4  ;;  %s1108_s10 = sshll.u32 %s263_s12, 6  ;;  %s1521_s7 = int_to_ptr.vmem [resolvable:$true] %s267_s7 }
  0x1e   : > { %p1525_p0 = pnand %p1165_p13, %p1492_p3  ;;  %s1532_s13 = scalar_lea.hbm %s1740_s0, %s1108_s10 }
  0x1f   : > { %s254_s24 = scalar_lea.sflag [#allocation7], %s253_s21  ;;  %s1261_s11 = scalar_lea.hbm %s1532_s13, 256 }
  0x20   : > { %p1262_p4 = scmp.ne.s32.totalorder %s1532_s13, %s1261_s11  ;;  %p1263_p3 = pneg %p1525_p0 }
  0x21   : > { %s1266_s23 = scalar_lea.hbm %s1740_s0, 1024  ;;  %p1267_p7 = scmp.lt.u32.totalorder %s1532_s13, %s1740_s0 }
  0x22   : > { %p1264_p5 = pnand %p1263_p3, %p1262_p4  ;;  %p1268_p10 = scmp.lt.u32.totalorder %s1266_s23, %s1261_s11 }
  0x23   : > { %p1270_p13 = scmp.lt.u32.totalorder %s1261_s11, %s1532_s13 }
  0x24   : > { %p1265_p6 = pneg %p1264_p5  ;;  %p1269_p11 = por %p1268_p10, %p1267_p7 }
  0x26   : > { %p1271_p1 = por %p1270_p13, %p1269_p11 }
  0x28   : > { %p1272_p2 = pnand %p1271_p1, %p1265_p6 }
  0x2a   : > { %1275 = shalt.err (!%p1272_p2)
}
  0x2b   : > { %s1276_s21 = scalar_lea.vmem %s1521_s7, 256  ;;  %s1391_s18 = smov [#allocation6]  }
  0x2c   : > { %p1277_p4 = scmp.ne.s32.totalorder %s1521_s7, %s1276_s21  ;;  %s1281_s19 = sshll.u32 %s1391_s18, 4  ;;  %s1282_s19 = int_to_ptr.vmem [resolvable:$false] %s1281_s19 }
  0x2d   : > { %s1283_s12 = scalar_lea.vmem %s1282_s19, 512  ;;  %p1284_p9 = scmp.lt.s32.totalorder %s1521_s7, %s1282_s19 }
  0x2e   : > { %p1279_p5 = pnand %p1277_p4, %p1263_p3  ;;  %p1285_p7 = scmp.lt.s32.totalorder %s1283_s12, %s1276_s21 }
  0x30   : > { %p1280_p12 = pneg %p1279_p5  ;;  %p1286_p10 = por %p1285_p7, %p1284_p9 }
  0x32   : > { %p1287_p11 = pnand %p1286_p10, %p1280_p12 }
  0x34   : > { %1290 = shalt.err (!%p1287_p11)
}
  0x35   : > { %1160 = dma.hbm_to_vmem [thread:$0]  (!%p1525_p0), %s1532_s13, 256, %s1521_s7, %s254_s24  }
  0x36   : > { %p1762_p1 = scmp.lt.s32.totalorder %s1389_s8, 5  ;;  %p1763_p2 = scmp.ge.s32.totalorder %s1389_s8, 1 }
  0x38   : > { %p273_p3 = pnand %p1763_p2, %p1762_p1 }
  0x39   : > { %s1566_s11 = sand.u32 (!%p273_p3), 1, %s1365_s25  }
  0x3a   : > { %276 = sbr.rel (%p273_p3) target bundleno = 819 (0x333), region = 48  ;;  %s1110_s15 = sshll.u32 (!%p273_p3), %s1566_s11, 4 }
  0x3b   : > { %s279_s23 = scalar_lea.sflag (!%p273_p3), [#allocation7], %s1566_s11  ;;  %s282_s9 = scalar_lea.vmem (!%p273_p3), [#allocation6], %s1110_s15 }
  0x41   : > { %1352 = dma.done.wait (%p1500_p8), %s279_s23, 256  }
  0x42   : > { %1354 = vsyncadd (%p1500_p8), %s279_s23, 4294967040  ;;  %s1111_s7 = sshll.u32 %s1566_s11, 5  ;;  %v1575_v0 = vld [vmem:[%s282_s9] sm:$0xff]  ;;  %v1577_v1 = vld [vmem:[%s282_s9 + $0x8] sm:$0xff]  ;;  %p1112_p9 = scmp.ne.s32.totalorder %s1373_s27, 0 }
  0x43   : > { %s1579_s14 = scalar_lea.vmem [#allocation9], %s1111_s7  ;;  %vm321_vm0 = vcmask (!%p1112_p9), 1044448   ;;  %vm323_vm1 = vcmask (!%p1112_p9), 1048544   ;;  %v1392_v2 = vmov (!%p1112_p9), 0.0  }
  0x44   : > { %320 = sbr.rel (%p1112_p9) target bundleno = 75 (0x4b), region = 56  ;;  %322 = vst.msk [vmem:[#allocation2] sm:$0xf] (!%p1112_p9), %vm321_vm0, %v1392_v2 }
  0x45   : > { %324 = vst.msk [vmem:[#allocation3] sm:$0xff] (!%p1112_p9), %vm323_vm1, %v1392_v2 }
  0x4b PF: > { %326 = vst [vmem:[#allocation2 + $0xc] sm:$0xff] %v1577_v1  ;;  %325 = vst [vmem:[#allocation2 + $0x4] sm:$0xff] %v1575_v0  ;;  %v1588_v3 = vcombine.high %v1575_v0, %v1575_v0  ;;  %v409_v4 = vrot.slane %v1577_v1, 4  ;;  %vm411_vm2 = vcmask 1044448   ;;  %v1594_v5 = vcombine.high %v1577_v1, %v1577_v1  ;;  %s1393_s16 = smov 4   ;;  %s1394_s13 = smov 2  }
  0x4c   : > { %335 = vst [vmem:[#allocation4 + $0x30] sm:$0xf] %v1577_v1  ;;  %333 = vst [vmem:[#allocation4 + $0x20] sm:$0xf] %v1575_v0  ;;  %v1395_v14 = vmov 0.0   ;;  %v413_v15 = vld [vmem:[%s1742_s2] sm:$0xff] }
  0x4d   : > { %334 = vst [vmem:[#allocation4 + $0x28] sm:$0xf] %v1588_v3  ;;  %336 = vst [vmem:[#allocation4 + $0x38] sm:$0xf] %v1594_v5  ;;  %500 = vmatprep.mubr.f32.mxu0 %v1395_v14  ;;  %571 = vmatprep.mubr.f32.mxu1 %v1395_v14  ;;  %v1396_v16 = vmov 0   ;;  %vm355_vm3 = vcmask 31744  }
  0x4e   : > { %1237 = vset.pattern.permute.xlu0 %v1396_v16  ;;  %1258 = vset.pattern.permute.xlu1 %v1396_v16  ;;  %vm387_vm4 = vcmask 15360   ;;  %vm423_vm5 = vcmask 1043456   ;;  %vm1397_vm6 = vmmov 1   ;;  %v400_v47 = vld [vmem:[%s1741_s1] sm:$0xff]  ;;  %vm419_vm8 = vcmask 97280   ;;  %v590_v56 = vld [vmem:[#allocation3] sm:$0xff] }
  0x4f   : > { %vm1621_vm7 = vmpackc.low %vm423_vm5, %vm1397_vm6  ;;  %vm667_vm9 = vcmask 1048544   ;;  %vm675_vm10 = vcmask 195584   ;;  %s1128_s24 = sshll.u32 %s1373_s27, 2  ;;  %s1129_s10 = sshll.u32 %s1377_s28, 3 }
  0x50   : > { %s1010_s21 = sadd.s32 %s1129_s10, %s1128_s24  ;;  %s1014_s28 = sshll.u32 %s1579_s14, 4  ;;  %s1685_s28 = int_to_ptr.vmem [resolvable:$true] %s1014_s28 }
  0x51   : > { %s1130_s27 = sshll.u32 %s1010_s21, 7  ;;  %s1766_s12 = sld [smem:[#allocation15_spill]] }
  0x52   : > { %v339_v6 = vld [vmem:[#allocation2 + $0x10] sm:$0xf]  ;;  %v338_v7 = vld [vmem:[#allocation2 + $0x8] sm:$0xff]  ;;  %v368_v8 = vld [vmem:[#allocation2] sm:$0xff]  ;;  %s998_s23 = scalar_lea.sflag [#allocation8], %s1566_s11  ;;  %s1291_s9 = scalar_lea.vmem %s1685_s28, 512 }
  0x53   : > { %353 = vrot.lane.b32.xlu1 %v339_v6, %s1393_s16  ;;  %349 = vrot.lane.b32.xlu0 %v338_v7, %s1393_s16  ;;  %v344_v9 = vcombine.high %v338_v7, %v338_v7  ;;  %412 = vst.msk [vmem:[#allocation2] sm:$0xf] %vm411_vm2, %v409_v4  ;;  %v375_v10 = vcombine.low %v338_v7, %v338_v7  ;;  %v1260_v12 = vld [vmem:[#allocation2 + $0x10] ss:$0 sps:$4 sm:$0xff]   ;;  %v407_v40 = vld [vmem:[#allocation4 + $0x30] sm:$0xf]  ;;  %p1292_p8 = scmp.ne.s32.totalorder %s1685_s28, %s1291_s9 }
  0x54   : > { %v343_v11 = vcombine.high %v368_v8, %v368_v8  ;;  %v374_v13 = vcombine.low %v368_v8, %v368_v8  ;;  %v406_v31 = vld [vmem:[#allocation4 + $0x28] sm:$0xf]  ;;  %v408_v39 = vld [vmem:[#allocation4 + $0x38] sm:$0xf]  ;;  %v405_v45 = vld [vmem:[#allocation4 + $0x20] sm:$0xf] }
  0x55   : > { %v669_v4 = vld [vmem:[%s1744_s4] sm:$0xff]  ;;  %p1767_p12 = scmp.ne.s32.totalorder %s1759_s17, 0  ;;  %s1398_s7 = smov [#allocation9]  }
  0x56   : > { %v826_v6 = vld [vmem:[%s1746_s6] sm:$0xff] }
  0x57   : > { %379 = vrot.lane.b32.xlu0 %v368_v8, %s1394_s13  ;;  %351 = vrot.lane.b32.xlu1 %v344_v9, %s1393_s16  ;;  %s1683_s15 = scalar_lea.hbm %s1766_s12, %s1130_s27  ;;  %p1293_p0 = pnand %p1292_p8, %p1767_p12 }
  0x59   : > { %p1294_p6 = pneg %p1293_p0 }
  0x5b   : > { %381 = vrot.lane.b32.xlu1 %v375_v10, %s1394_s13  ;;  %347 = vrot.lane.b32.xlu0 %v343_v11, %s1393_s16 }
  0x5f   : > { %385 = vrot.lane.b32.xlu1 %v1260_v12, %s1394_s13  ;;  %383 = vrot.lane.b32.xlu0 %v338_v7, %s1394_s13 }
  0x63   : > { %377 = vrot.lane.b32.xlu1 %v374_v13, %s1394_s13  ;;  %345 = vrot.lane.b32.xlu0 %v368_v8, %s1393_s16 }
  0x67   : > { %416 = vperm.xlu0 %1237, %v413_v15  }
  0xc5   : > { %v354_v17 = vpop.permute.xlu1 %353  ;;  %v350_v18 = vpop.permute.xlu0 %349 }
  0xc9   : > { %v380_v19 = vpop.permute.xlu0 %379  ;;  %v352_v20 = vpop.permute.xlu1 %351 }
  0xca   : > { %v358_v21 = vsel %vm355_vm3, %v350_v18, %v352_v20  ;;  %v359_v22 = vsel %vm355_vm3, %v352_v20, %v354_v17 }
  0xcb   : > { %366 = vst [vmem:[#allocation4 + $0x10] sm:$0xf] %v358_v21  ;;  %367 = vst [vmem:[#allocation4 + $0x18] sm:$0xf] %v359_v22 }
  0xcd   : > { %v382_v23 = vpop.permute.xlu1 %381  ;;  %v348_v24 = vpop.permute.xlu0 %347 }
  0xce   : > { %v389_v25 = vsel %vm387_vm4, %v380_v19, %v382_v23  ;;  %v357_v26 = vsel %vm355_vm3, %v348_v24, %v350_v18 }
  0xcf   : > { %397 = vst [vmem:[#allocation4 + $0x8] sm:$0xf0] %v389_v25  ;;  %365 = vst [vmem:[#allocation4 + $0x8] sm:$0xf] %v357_v26 }
  0xd1   : > { %v386_v27 = vpop.permute.xlu1 %385  ;;  %v384_v28 = vpop.permute.xlu0 %383 }
  0xd2   : > { %v390_v29 = vsel %vm387_vm4, %v382_v23, %v384_v28  ;;  %v391_v30 = vsel %vm387_vm4, %v384_v28, %v386_v27 }
  0xd3   : > { %398 = vst [vmem:[#allocation4 + $0x10] sm:$0xf0] %v390_v29  ;;  %399 = vst [vmem:[#allocation4 + $0x18] sm:$0xf0] %v391_v30 }
  0xd5   : > { %v378_v32 = vpop.permute.xlu1 %377  ;;  %v346_v33 = vpop.permute.xlu0 %345 }
  0xd6   : > { %v388_v34 = vsel %vm387_vm4, %v378_v32, %v380_v19  ;;  %v356_v35 = vsel %vm355_vm3, %v346_v33, %v348_v24  ;;  %v402_v36 = vld [vmem:[#allocation4 + $0x8] sm:$0xff] }
  0xd7   : > { %396 = vst [vmem:[#allocation4] sm:$0xf0] %v388_v34  ;;  %364 = vst [vmem:[#allocation4] sm:$0xf] %v356_v35  ;;  %v1133_v38 = vpack.c.bf16 %v406_v31, %v402_v36  ;;  %v654_v34 = vld [vmem:[%s1743_s3] sm:$0xff] }
  0xd8   : > { %v825_v35 = vld [vmem:[%s1745_s5] sm:$0xff] }
  0xd9   : > { %1135 = vmatprep.subr.msk.bf16.mxu0 %vm1621_vm7, %v1133_v38 }
  0xda   : > { %v404_v41 = vld [vmem:[#allocation4 + $0x18] sm:$0xff]  ;;  %v403_v42 = vld [vmem:[#allocation4 + $0x10] sm:$0xff] }
  0xdb   : > { %v1139_v43 = vpack.c.bf16 %v408_v39, %v404_v41  ;;  %v1142_v44 = vpack.c.bf16 %v407_v40, %v403_v42 }
  0xdd   : > { %1141 = vmatprep.subr.msk.bf16.mxu1 %vm1621_vm7, %v1139_v43 }
  0xde   : > { %1144 = vmatpush1.bf16.msk.msra.mxu1 %vm1621_vm7, %v1142_v44  ;;  %v401_v46 = vld [vmem:[#allocation4] sm:$0xff] }
  0xdf   : > { %v1136_v48 = vpack.c.bf16 %v405_v45, %v401_v46 }
  0xe1   : > { %1138 = vmatpush1.bf16.msk.msra.mxu0 %vm1621_vm7, %v1136_v48  ;;  %1118 = vmatmul.mubr.msk.f32.vlgmr.msra.gmra.mrb[0].mxu1 %vm419_vm8, %v400_v47 }
  0xe2   : > { %814 = vmatprep.mubr.f32.mxu1 %v1395_v14 }
  0xe4   : > { %1115 = vmatmul.mubr.msk.f32.vlgmr.msra.gmra.mrb[0].mxu0 %vm419_vm8, %v400_v47 }
  0xe5   : > { %743 = vmatprep.mubr.f32.mxu0 %v1395_v14 }
  0xe6   : > { %v417_v49 = vpop.permute.xlu0 %416 }
 0x1b4   : > { %v573_v50 = vpop.f32.mrb[0].mxu1 }
 0x1b5   : > { %v574_v51 = vadd.f32 %v573_v50, %v417_v49  ;;  %v575_v52 = vpop.f32.mrb[1].mxu1 }
 0x1b6   : > { %v576_v53 = vadd.f32 %v575_v52, %v417_v49 }
 0x1b7   : > { %v502_v54 = vpop.f32.mrb[0].mxu0  ;;  %v580_v55 = vmax.f32 %v574_v51, 0.0 }
 0x1b8   : > { %v503_v57 = vadd.f32 %v502_v54, %v417_v49  ;;  %v504_v58 = vpop.f32.mrb[1].mxu0  ;;  %v581_v59 = vmax.f32 %v576_v53, 0.0 }
 0x1b9   : > { %v505_v60 = vadd.f32 %v504_v58, %v417_v49 }
 0x1ba   : > { %v578_v61 = vmax.f32 %v503_v57, 0.0  ;;  %668 = vst.msk [vmem:[#allocation3] sm:$0xff] %vm667_vm9, %v581_v59  ;;  %v1243_v2 = vpack.i.bf16 %v581_v59, %v580_v55 }
 0x1bb   : > { %v579_v62 = vmax.f32 %v505_v60, 0.0 }
 0x1bd   : > { %v1248_v63 = vpack.i.bf16 %v579_v62, %v578_v61 }
 0x1bf   : > { %1249 = vrot.lane.b32.xlu0 %v1248_v63, %s1394_s13  ;;  %1239 = vrot.lane.b32.xlu1 %v1248_v63, %s1393_s16 }
 0x1c3   : > { %600 = vrot.lane.b32.xlu0 %v590_v56, %s1393_s16  ;;  %1244 = vrot.lane.b32.xlu1 %v1243_v2, %s1393_s16  ;;  %s1295_s16 = sshll.u32 %s1398_s7, 4  ;;  %s1296_s16 = int_to_ptr.vmem [resolvable:$false] %s1295_s16 }
 0x1c4   : > { %p1298_p13 = scmp.lt.s32.totalorder %s1685_s28, %s1296_s16 }
 0x1c7   : > { %672 = vperm.xlu0 %1237, %v669_v4   ;;  %1254 = vrot.lane.b32.xlu1 %v1243_v2, %s1394_s13 }
 0x1cb   : > { %632 = vrot.lane.b32.xlu1 %v590_v56, %s1394_s13  ;;  %s1297_s13 = scalar_lea.vmem %s1296_s16, 1024 }
 0x1cc   : > { %p1299_p4 = scmp.lt.s32.totalorder %s1297_s13, %s1291_s9 }
 0x1ce   : > { %p1300_p5 = por %p1299_p4, %p1298_p13 }
 0x1cf   : > { %829 = vperm.xlu1 %1258, %v826_v6  }
 0x1d0   : > { %p1301_p7 = pnand %p1300_p5, %p1294_p6 }
 0x231   : > { %v1250_v7 = vpop.permute.xlu0 %1249  ;;  %v1240_v8 = vpop.permute.xlu1 %1239 }
 0x232   : > { %v1252_v9 = vunpack.i.h.bf16 %v1250_v7  ;;  %v1251_v10 = vunpack.i.l.bf16 %v1250_v7  ;;  %v1242_v11 = vunpack.i.h.bf16 %v1240_v8  ;;  %v1241_v12 = vunpack.i.l.bf16 %v1240_v8 }
 0x234   : > { %v611_v13 = vsel %vm355_vm3, %v1241_v12, %v1242_v11  ;;  %v643_v15 = vsel %vm387_vm4, %v1251_v10, %v1252_v9 }
 0x235   : > { %v1245_v16 = vpop.permute.xlu1 %1244  ;;  %v1145_v17 = vpack.c.bf16 %v643_v15, %v611_v13  ;;  %v601_v23 = vpop.permute.xlu0 %600 }
 0x236   : > { %v1247_v18 = vunpack.i.h.bf16 %v1245_v16  ;;  %v1246_v19 = vunpack.i.l.bf16 %v1245_v16  ;;  %v610_v31 = vsel %vm355_vm3, %v601_v23, %v1241_v12 }
 0x237   : > { %1146 = vmatprep.subr.bf16.mxu0 %v1145_v17 }
 0x238   : > { %v612_v24 = vsel %vm355_vm3, %v1242_v11, %v1246_v19  ;;  %v613_v26 = vsel %vm355_vm3, %v1246_v19, %v1247_v18 }
 0x239   : > { %v1255_v20 = vpop.permute.xlu1 %1254 }
 0x23a   : > { %v1257_v21 = vunpack.i.h.bf16 %v1255_v20  ;;  %v1256_v22 = vunpack.i.l.bf16 %v1255_v20 }
 0x23c   : > { %v644_v25 = vsel %vm387_vm4, %v1252_v9, %v1256_v22  ;;  %v645_v27 = vsel %vm387_vm4, %v1256_v22, %v1257_v21 }
 0x23d   : > { %v1151_v28 = vpack.c.bf16 %v644_v25, %v612_v24  ;;  %v633_v29 = vpop.permute.xlu1 %632  ;;  %v1149_v30 = vpack.c.bf16 %v645_v27, %v613_v26 }
 0x23e   : > { %v642_v32 = vsel %vm387_vm4, %v633_v29, %v1251_v10 }
 0x23f   : > { %v1147_v33 = vpack.c.bf16 %v642_v32, %v610_v31  ;;  %1150 = vmatprep.subr.bf16.mxu1 %v1149_v30 }
 0x240   : > { %1152 = vmatpush1.bf16.msra.mxu1 %v1151_v28 }
 0x241   : > { %1148 = vmatpush1.bf16.msra.mxu0 %v1147_v33  ;;  %754 = vmatprep.subr.mxu1 %v581_v59 }
 0x242   : > { %683 = vmatprep.subr.mxu0 %v579_v62 }
 0x244   : > { %755 = vmatpush1.msra.mxu1 %v580_v55 }
 0x245   : > { %684 = vmatpush1.msra.mxu0 %v578_v61  ;;  %1120 = vmatmul.mubr.msk.f32.vlgmr.msra.gmra.mrb[2].mxu1 %vm675_vm10, %v654_v34 }
 0x246   : > { %1119 = vmatmul.mubr.msk.f32.vlgmr.msra.gmra.mrb[2].mxu0 %vm675_vm10, %v654_v34  ;;  %1121 = vmatprep.subr.msk.mxu0 %vm423_vm5, %v1588_v3  ;;  %v673_v3 = vpop.permute.xlu0 %672 }
 0x247   : > { %1124 = vmatprep.subr.msk.mxu1 %vm423_vm5, %v1594_v5  ;;  %1122 = vmatpush1.msk.msra.mxu0 %vm423_vm5, %v1575_v0 }
 0x248   : > { %1125 = vmatpush1.msk.msra.mxu1 %vm423_vm5, %v1577_v1  ;;  %978 = vmatprep.mubr.f32.mxu1 %v1395_v14 }
 0x249   : > { %907 = vmatprep.mubr.f32.mxu0 %v1395_v14  ;;  %1126 = vmatmul.mubr.msk.f32.vlgmr.msra.gmra.mrb[4].mxu1 %vm355_vm3, %v825_v35 }
 0x24a   : > { %1123 = vmatmul.mubr.msk.f32.vlgmr.msra.gmra.mrb[4].mxu0 %vm355_vm3, %v825_v35 }
 0x24e   : > { %v830_v41 = vpop.permute.xlu1 %829 }
 0x318   : > { %v816_v36 = vpop.f32.mrb[2].mxu1 }
 0x319   : > { %v817_v37 = vadd.f32 %v816_v36, %v673_v3  ;;  %v745_v5 = vpop.f32.mrb[2].mxu0  ;;  %v818_v38 = vpop.f32.mrb[3].mxu1 }
 0x31a   : > { %v746_v39 = vadd.f32 %v745_v5, %v673_v3  ;;  %v819_v40 = vadd.f32 %v818_v38, %v673_v3  ;;  %v747_v0 = vpop.f32.mrb[3].mxu0 }
 0x31b   : > { %v748_v1 = vadd.f32 %v747_v0, %v673_v3  ;;  %v823_v43 = vmax.f32 %v817_v37, 0.0 }
 0x31c   : > { %v980_v42 = vpop.f32.mrb[4].mxu1  ;;  %v821_v46 = vmax.f32 %v746_v39, 0.0  ;;  %v824_v47 = vmax.f32 %v819_v40, 0.0 }
 0x31d   : > { %v981_v14 = vadd.f32 %v980_v42, %v830_v41  ;;  %v909_v44 = vpop.f32.mrb[4].mxu0  ;;  %v982_v45 = vpop.f32.mrb[5].mxu1  ;;  %v822_v51 = vmax.f32 %v748_v1, 0.0 }
 0x31e   : > { %v910_v48 = vadd.f32 %v909_v44, %v830_v41  ;;  %v983_v49 = vadd.f32 %v982_v45, %v830_v41  ;;  %v911_v50 = vpop.f32.mrb[5].mxu0 }
 0x31f   : > { %v987_v52 = vadd.f32 %v981_v14, %v823_v43  ;;  %v912_v53 = vadd.f32 %v911_v50, %v830_v41 }
 0x320   : > { %v985_v54 = vadd.f32 %v910_v48, %v821_v46  ;;  %v988_v55 = vadd.f32 %v983_v49, %v824_v47 }
 0x321   : > { %v991_v56 = vmax.f32 %v987_v52, 0.0  ;;  %v986_v57 = vadd.f32 %v912_v53, %v822_v51 }
 0x322   : > { %v989_v58 = vmax.f32 %v985_v54, 0.0  ;;  %v992_v59 = vmax.f32 %v988_v55, 0.0 }
 0x323   : > { %995 = vst [vmem:[%s1579_s14 + $0x10] sm:$0xff] %v991_v56  ;;  %v990_v60 = vmax.f32 %v986_v57, 0.0 }
 0x324   : > { %993 = vst [vmem:[%s1579_s14] sm:$0xff] %v989_v58  ;;  %996 = vst [vmem:[%s1579_s14 + $0x18] sm:$0xff] %v992_v59 }
 0x325   : > { %994 = vst [vmem:[%s1579_s14 + $0x8] sm:$0xff] %v990_v60 }
 0x326   : > { %1304 = shalt.err (!%p1301_p7)
}
 0x327   : > { %s1305_s11 = scalar_lea.hbm %s1683_s15, 512  ;;  %s1309_s10 = scalar_lea.hbm %s1766_s12, 2048 }
 0x328   : > { %p1306_p10 = scmp.ne.s32.totalorder %s1683_s15, %s1305_s11  ;;  %p1310_p2 = scmp.lt.u32.totalorder %s1683_s15, %s1766_s12 }
 0x329   : > { %p1311_p3 = scmp.lt.u32.totalorder %s1309_s10, %s1305_s11  ;;  %p1313_p8 = scmp.lt.u32.totalorder %s1305_s11, %s1683_s15 }
 0x32a   : > { %p1307_p11 = pnand %p1306_p10, %p1767_p12 }
 0x32b   : > { %p1312_p9 = por %p1311_p3, %p1310_p2 }
 0x32c   : > { %p1308_p1 = pneg %p1307_p11 }
 0x32d   : > { %p1314_p0 = por %p1313_p8, %p1312_p9 }
 0x32f   : > { %p1315_p6 = pnand %p1314_p0, %p1308_p1 }
 0x331   : > { %1318 = shalt.err (!%p1315_p6)
}
 0x332   : > { %1155 = dma.vmem_to_hbm [thread:$0]  (%p1767_p12), %s1685_s28, 512, %s1683_s15, %s998_s23  }
 0x333 PF: > { %s1768_s18 = sld [smem:[#allocation12_spill]]  ;;  %p1166_p13 = scmp.ge.s32.totalorder %s1389_s8, 2 }
 0x334   : > { %p1769_p4 = scmp.ne.s32.totalorder %s1760_s20, 0 }
 0x336   : > { %p1162_p5 = pnand %p1166_p13, %p1769_p4 }
 0x339   : > { %s1026_s19 = sand.u32 1, %s1768_s18  }
 0x33a   : > { %s1027_s9 = scalar_lea.sflag [#allocation8], %s1026_s19 }
 0x33b   : > { %1356 = dma.done.wait (!%p1162_p5), %s1027_s9, 512  }
 0x33c   : > { %1358 = vsyncadd (!%p1162_p5), %s1027_s9, 4294966784  ;;  %s23_s8 = sadd.s32 1, %s1389_s8   ;;  %s1770_s17 = sld [smem:[#allocation13_spill]] }
 0x33d   : > { %p20_p7 = scmp.ge.s32.totalorder %s23_s8, 6   ;;  %s1771_s15 = sld [smem:[#allocation14_spill]] }
 0x33e   : > { %s1772_s24 = smov %s1365_s25  ;;  %s1773_s25 = smov %s1369_s26 }
 0x33f   : > { %s1774_s26 = smov %s1517_s22  ;;  %s1775_s27 = smov %s1381_s29 }
 0x340   : > { %s1776_s28 = smov %s1385_s30  ;;  %22 = sbr.rel (!%p20_p7) target bundleno = 9 (0x9), region = 97 }
 0x342   : > { %s1777_s29 = smov %s1770_s17 }
 0x343   : > { %s1778_s30 = smov %s1771_s15 }
 0x347   :  { %1032 = vsyncpa [#allocation7], 1 }
 0x348   :  { %1034 = vsyncpa [#allocation7 + $0x1], 1 }
 0x349   :  { %1035 = vsyncpa [#allocation8], 1 }
 0x34a   :  { %1037 = vsyncpa [#allocation8 + $0x1], 1 }

</bundles_post_ra>
